<compile_context>
chip_gen: v5e
topology: v5e:2x2
jax: 0.10.0
libtpu: 0.0.40
codegen_flags: <defaults>
</compile_context>

<pallas_src>
import functools

import jax
import jax.numpy as jnp
from jax.experimental import pallas as pl
from jax.experimental.pallas import tpu as pltpu


def _round_up(x, m):
    return (x + m - 1) // m * m


def _fused_decoder_kernel(x_ref, w_ref, b_ref, *out_refs, num_layers):
    # x_ref: (TILE_B, D_PAD)   w_ref: (L, D_PAD, D_PAD)   b_ref: (L, 1, D_PAD)
    # out_refs[l]: (TILE_B, D_PAD)  -- padded lanes hold sigmoid(0)=0.5; the
    # next layer's zero weight rows make them inert, and the wrapper slices
    # them away, so results stay exact.
    h = x_ref[...]
    for l in range(num_layers):  # static unroll; L is tiny
        z = jnp.dot(h, w_ref[l], preferred_element_type=jnp.float32)
        z = z + b_ref[l]                      # (1, D_PAD) broadcast over batch
        h = jax.nn.sigmoid(z)
        out_refs[l][...] = h.astype(out_refs[l].dtype)


def make_layer_sizes(latent_size, out_size, num_layers):
    # Mirrors the PyTorch __init__ exactly (integer division, then reverse).
    layer_sizes = [out_size] + [
        out_size - (i + 1) * (out_size - latent_size) // num_layers
        for i in range(num_layers)
    ]
    return layer_sizes[::-1]


def init_params(key, layer_sizes):
    """Deterministic synthetic params, shaped like nn.Linear defaults.

    W ~ U(-1/sqrt(fan_in), 1/sqrt(fan_in)), same bound for bias.
    Stored as (in, out) for the kernel (transposed vs. PyTorch storage).
    """
    params = []
    for i in range(len(layer_sizes) - 1):
        fan_in, fan_out = layer_sizes[i], layer_sizes[i + 1]
        kw, kb = jax.random.split(jax.random.fold_in(key, i))
        bound = 1.0 / jnp.sqrt(jnp.float32(fan_in))
        w = jax.random.uniform(kw, (fan_in, fan_out), jnp.float32,
                               minval=-bound, maxval=bound)
        b = jax.random.uniform(kb, (fan_out,), jnp.float32,
                               minval=-bound, maxval=bound)
        params.append((w, b))
    return params


def _pack_params(params, d_pad):
    """Zero-pad every (Din, Dout) weight / (Dout,) bias to (D_PAD, D_PAD)."""
    L = len(params)
    w_stack = jnp.zeros((L, d_pad, d_pad), jnp.float32)
    b_stack = jnp.zeros((L, 1, d_pad), jnp.float32)
    for i, (w, b) in enumerate(params):
        din, dout = w.shape
        w_stack = w_stack.at[i, :din, :dout].set(w)
        b_stack = b_stack.at[i, 0, :dout].set(b)
    return w_stack, b_stack


def sparse_decoder_forward(x, params, layer_sizes):
    """Forward pass: returns (final_activation, list_of_feature_maps)."""
    B, latent = x.shape
    L = len(params)
    assert L == len(layer_sizes) - 1 and latent == layer_sizes[0]

    # Lane-dense padded width shared by every layer (multiple of 128).
    d_pad = _round_up(max(layer_sizes), 128)

    # Batch tiling: multiple of 8 sublanes; pipeline-friendly for large B.
    tile_b = 256 if B >= 256 else _round_up(B, 8)
    b_pad = _round_up(B, tile_b)
    grid_b = b_pad // tile_b

    x_pad = jnp.zeros((b_pad, d_pad), jnp.float32).at[:B, :latent].set(
        x.astype(jnp.float32))
    w_stack, b_stack = _pack_params(params, d_pad)

    kernel = functools.partial(_fused_decoder_kernel, num_layers=L)

    outs = pl.pallas_call(
        kernel,
        out_shape=[jax.ShapeDtypeStruct((b_pad, d_pad), jnp.float32)
                   for _ in range(L)],
        grid=(grid_b,),
        in_specs=[
            # Activation tile: marches down the batch with the grid.
            pl.BlockSpec((tile_b, d_pad), lambda i: (i, 0)),
            # Stacked weights / biases: full arrays, VMEM-resident every step.
            pl.BlockSpec((L, d_pad, d_pad), lambda i: (0, 0, 0)),
            pl.BlockSpec((L, 1, d_pad), lambda i: (0, 0, 0)),
        ],
        out_specs=[pl.BlockSpec((tile_b, d_pad), lambda i: (i, 0))
                   for _ in range(L)],
        compiler_params=pltpu.CompilerParams(
            dimension_semantics=("parallel",),   # batch axis: megacore-safe
            vmem_limit_bytes=32 * 1024 * 1024,   # well under v7x 64 MiB/TC
        ),
    )(x_pad, w_stack, b_stack)

    # Slice padding away: per-layer feature maps at their true widths.
    feature_maps = [outs[i][:B, :layer_sizes[i + 1]] for i in range(L)]
    return feature_maps[-1], feature_maps


def sparse_decoder_ref(x, params):
    """Pure-JAX reference for correctness checking."""
    feature_maps = []
    for (w, b) in params:
        x = jax.nn.sigmoid(x @ w + b)
        feature_maps.append(x)
    return x, feature_maps


if __name__ == "__main__":
    # Small shapes consistent with the module: latent 8 -> out 32, 3 layers.
    latent_size = 8
    out_size = 32
    num_layers = 3
    n_features = 4          # unused in forward (kept for signature parity)
    batch = 2

    layer_sizes = make_layer_sizes(latent_size, out_size, num_layers)
    # layer_sizes == [8, 16, 24, 32] -> Linear(8,16), Linear(16,24), Linear(24,32)

    key = jax.random.PRNGKey(0)
    kx, kp = jax.random.split(key)
    x = jax.random.normal(kx, (batch, latent_size), jnp.float32)
    params = init_params(kp, layer_sizes)

    out, fmaps = sparse_decoder_forward(x, params, layer_sizes)
    out = jax.block_until_ready(out)
    fmaps = [jax.block_until_ready(f) for f in fmaps]

    # Sanity check against a pure-JAX reference.
    ref_out, ref_fmaps = sparse_decoder_ref(x, params)
    assert out.shape == (batch, out_size)
    assert len(fmaps) == num_layers
    assert jnp.allclose(out, ref_out, atol=1e-5, rtol=1e-5)
    for f, rf in zip(fmaps, ref_fmaps):
        assert f.shape == rf.shape
        assert jnp.allclose(f, rf, atol=1e-5, rtol=1e-5)

    print("KERNEL_OK")
</pallas_src>

<mosaic_0001>
module attributes {stable_mosaic.version = 11 : i64} {
  func.func @_fused_decoder_kernel(%arg0: i32, %arg1: memref<8x128xf32, #tpu.memory_space<vmem>>, %arg2: memref<3x128x128xf32, #tpu.memory_space<vmem>>, %arg3: memref<3x1x128xf32, #tpu.memory_space<vmem>>, %arg4: memref<8x128xf32, #tpu.memory_space<vmem>>, %arg5: memref<8x128xf32, #tpu.memory_space<vmem>>, %arg6: memref<8x128xf32, #tpu.memory_space<vmem>>) attributes {dimension_semantics = [#tpu.dimension_semantics<parallel>], iteration_bounds = array<i64: 1>, scalar_prefetch = 0 : i64, scratch_operands = 0 : i64, tpu.core_type = #tpu.core_type<tc>, window_params = [{transform_indices = @transform_0, window_bounds = array<i64: 8, 128>}, {pipeline_mode = #tpu.pipeline_mode<synchronous>, transform_indices = @transform_1, window_bounds = array<i64: 3, 128, 128>}, {pipeline_mode = #tpu.pipeline_mode<synchronous>, transform_indices = @transform_2, window_bounds = array<i64: 3, 1, 128>}, {transform_indices = @transform_3, window_bounds = array<i64: 8, 128>}, {transform_indices = @transform_4, window_bounds = array<i64: 8, 128>}, {transform_indices = @transform_5, window_bounds = array<i64: 8, 128>}]} {
    %c0 = arith.constant 0 : index
    %c0_0 = arith.constant 0 : index
    %0 = vector.load %arg1[%c0, %c0_0] : memref<8x128xf32, #tpu.memory_space<vmem>>, vector<8x128xf32>
    %c0_1 = arith.constant 0 : index
    %c0_2 = arith.constant 0 : index
    %c0_3 = arith.constant 0 : index
    %1 = vector.load %arg2[%c0_1, %c0_2, %c0_3] : memref<3x128x128xf32, #tpu.memory_space<vmem>>, vector<1x128x128xf32>
    %2 = vector.shape_cast %1 : vector<1x128x128xf32> to vector<128x128xf32>
    %cst = arith.constant dense<0.000000e+00> : vector<8x128xf32>
    %3 = tpu.matmul %0, %2, %cst {dimension_numbers = #tpu.dot_dimension_numbers<[1], [0], [0], [1], [0, 0, 1, 1], [], []>} : vector<8x128xf32>, vector<128x128xf32>, vector<8x128xf32> -> vector<8x128xf32>
    %c0_4 = arith.constant 0 : index
    %c0_5 = arith.constant 0 : index
    %c0_6 = arith.constant 0 : index
    %4 = vector.load %arg3[%c0_4, %c0_5, %c0_6] : memref<3x1x128xf32, #tpu.memory_space<vmem>>, vector<1x1x128xf32>
    %5 = vector.shape_cast %4 : vector<1x1x128xf32> to vector<1x128xf32>
    %6 = vector.broadcast %5 : vector<1x128xf32> to vector<8x128xf32>
    %7 = arith.addf %3, %6 : vector<8x128xf32>
    %8 = arith.negf %7 : vector<8x128xf32>
    %9 = math.exp %8 : vector<8x128xf32>
    %cst_7 = arith.constant 1.000000e+00 : f32
    %10 = vector.broadcast %cst_7 : f32 to vector<8x128xf32>
    %11 = arith.addf %10, %9 : vector<8x128xf32>
    %12 = arith.divf %10, %11 : vector<8x128xf32>
    %c0_8 = arith.constant 0 : index
    %c0_9 = arith.constant 0 : index
    %13 = vector.load %arg4[%c0_8, %c0_9] : memref<8x128xf32, #tpu.memory_space<vmem>>, vector<8x128xf32>
    tpu.vector_store %arg4[%c0_8, %c0_9], %12 {strides = array<i32>} : memref<8x128xf32, #tpu.memory_space<vmem>>, vector<8x128xf32>,
    %c1 = arith.constant 1 : index
    %c0_10 = arith.constant 0 : index
    %c0_11 = arith.constant 0 : index
    %14 = vector.load %arg2[%c1, %c0_10, %c0_11] : memref<3x128x128xf32, #tpu.memory_space<vmem>>, vector<1x128x128xf32>
    %15 = vector.shape_cast %14 : vector<1x128x128xf32> to vector<128x128xf32>
    %cst_12 = arith.constant dense<0.000000e+00> : vector<8x128xf32>
    %16 = tpu.matmul %12, %15, %cst_12 {dimension_numbers = #tpu.dot_dimension_numbers<[1], [0], [0], [1], [0, 0, 1, 1], [], []>} : vector<8x128xf32>, vector<128x128xf32>, vector<8x128xf32> -> vector<8x128xf32>
    %c1_13 = arith.constant 1 : index
    %c0_14 = arith.constant 0 : index
    %c0_15 = arith.constant 0 : index
    %17 = vector.load %arg3[%c1_13, %c0_14, %c0_15] : memref<3x1x128xf32, #tpu.memory_space<vmem>>, vector<1x1x128xf32>
    %18 = vector.shape_cast %17 : vector<1x1x128xf32> to vector<1x128xf32>
    %19 = vector.broadcast %18 : vector<1x128xf32> to vector<8x128xf32>
    %20 = arith.addf %16, %19 : vector<8x128xf32>
    %21 = arith.negf %20 : vector<8x128xf32>
    %22 = math.exp %21 : vector<8x128xf32>
    %cst_16 = arith.constant 1.000000e+00 : f32
    %23 = vector.broadcast %cst_16 : f32 to vector<8x128xf32>
    %24 = arith.addf %23, %22 : vector<8x128xf32>
    %25 = arith.divf %23, %24 : vector<8x128xf32>
    %c0_17 = arith.constant 0 : index
    %c0_18 = arith.constant 0 : index
    %26 = vector.load %arg5[%c0_17, %c0_18] : memref<8x128xf32, #tpu.memory_space<vmem>>, vector<8x128xf32>
    tpu.vector_store %arg5[%c0_17, %c0_18], %25 {strides = array<i32>} : memref<8x128xf32, #tpu.memory_space<vmem>>, vector<8x128xf32>,
    %c2 = arith.constant 2 : index
    %c0_19 = arith.constant 0 : index
    %c0_20 = arith.constant 0 : index
    %27 = vector.load %arg2[%c2, %c0_19, %c0_20] : memref<3x128x128xf32, #tpu.memory_space<vmem>>, vector<1x128x128xf32>
    %28 = vector.shape_cast %27 : vector<1x128x128xf32> to vector<128x128xf32>
    %cst_21 = arith.constant dense<0.000000e+00> : vector<8x128xf32>
    %29 = tpu.matmul %25, %28, %cst_21 {dimension_numbers = #tpu.dot_dimension_numbers<[1], [0], [0], [1], [0, 0, 1, 1], [], []>} : vector<8x128xf32>, vector<128x128xf32>, vector<8x128xf32> -> vector<8x128xf32>
    %c2_22 = arith.constant 2 : index
    %c0_23 = arith.constant 0 : index
    %c0_24 = arith.constant 0 : index
    %30 = vector.load %arg3[%c2_22, %c0_23, %c0_24] : memref<3x1x128xf32, #tpu.memory_space<vmem>>, vector<1x1x128xf32>
    %31 = vector.shape_cast %30 : vector<1x1x128xf32> to vector<1x128xf32>
    %32 = vector.broadcast %31 : vector<1x128xf32> to vector<8x128xf32>
    %33 = arith.addf %29, %32 : vector<8x128xf32>
    %34 = arith.negf %33 : vector<8x128xf32>
    %35 = math.exp %34 : vector<8x128xf32>
    %cst_25 = arith.constant 1.000000e+00 : f32
    %36 = vector.broadcast %cst_25 : f32 to vector<8x128xf32>
    %37 = arith.addf %36, %35 : vector<8x128xf32>
    %38 = arith.divf %36, %37 : vector<8x128xf32>
    %c0_26 = arith.constant 0 : index
    %c0_27 = arith.constant 0 : index
    %39 = vector.load %arg6[%c0_26, %c0_27] : memref<8x128xf32, #tpu.memory_space<vmem>>, vector<8x128xf32>
    tpu.vector_store %arg6[%c0_26, %c0_27], %38 {strides = array<i32>} : memref<8x128xf32, #tpu.memory_space<vmem>>, vector<8x128xf32>,
    return
  }
  func.func @transform_0(%arg0: i32) -> (i32, i32) {
    %c0_i32 = arith.constant 0 : i32
    %c0_i32_0 = arith.constant 0 : i32
    return %arg0, %c0_i32 : i32, i32
  }
  func.func @transform_1(%arg0: i32) -> (i32, i32, i32) {
    %c0_i32 = arith.constant 0 : i32
    %c0_i32_0 = arith.constant 0 : i32
    %c0_i32_1 = arith.constant 0 : i32
    %c0_i32_2 = arith.constant 0 : i32
    return %c0_i32, %c0_i32_0, %c0_i32_1 : i32, i32, i32
  }
  func.func @transform_2(%arg0: i32) -> (i32, i32, i32) {
    %c0_i32 = arith.constant 0 : i32
    %c0_i32_0 = arith.constant 0 : i32
    %c0_i32_1 = arith.constant 0 : i32
    %c0_i32_2 = arith.constant 0 : i32
    return %c0_i32, %c0_i32_0, %c0_i32_1 : i32, i32, i32
  }
  func.func @transform_3(%arg0: i32) -> (i32, i32) {
    %c0_i32 = arith.constant 0 : i32
    %c0_i32_0 = arith.constant 0 : i32
    return %arg0, %c0_i32 : i32, i32
  }
  func.func @transform_4(%arg0: i32) -> (i32, i32) {
    %c0_i32 = arith.constant 0 : i32
    %c0_i32_0 = arith.constant 0 : i32
    return %arg0, %c0_i32 : i32, i32
  }
  func.func @transform_5(%arg0: i32) -> (i32, i32) {
    %c0_i32 = arith.constant 0 : i32
    %c0_i32_0 = arith.constant 0 : i32
    return %arg0, %c0_i32 : i32, i32
  }
}

</mosaic_0001>

<bundles_post_ra>
// kernel: tpu_custom_call.1
= control target key start
LH: loop header
LB: loop body
LE: loop exit
PB: predicated region body
PF: predicated region fallthrough
CT: control target
= control target key end

     0   :  { %11 = vsyncpa [#allocation3], 0  ;;  %s536_s0 = inlined_call_operand.hbm [shape: f32[8,128], index: 0, kind: input, shape index: {}]   ;;  %s537_s1 = inlined_call_operand.hbm [shape: f32[3,128,128], index: 1, kind: input, shape index: {}]   ;;  %s538_s2 = inlined_call_operand.hbm [shape: f32[3,1,128], index: 2, kind: input, shape index: {}]   ;;  %s539_s3 = inlined_call_operand.hbm [shape: f32[8,128], index: 3, kind: output, shape index: {0}]   ;;  %s540_s4 = inlined_call_operand.hbm [shape: f32[8,128], index: 4, kind: output, shape index: {1}]   ;;  %s541_s5 = inlined_call_operand.hbm [shape: f32[8,128], index: 5, kind: output, shape index: {2}]  }
   0x1   :  { %12 = vsyncpa [#allocation6], 0 }
   0x2   :  { %13 = vsyncpa [#allocation4], 0  ;;  %s30_s20 = sshll.u32 %s537_s1, 4  ;;  %s31_s20 = int_to_ptr.hbm [resolvable:$true] %s30_s20 }
   0x3   :  { %14 = vsyncpa [#allocation10], 0  ;;  %s478_s21 = smov [#allocation5]   ;;  %s20_s25 = sshll.u32 %s536_s0, 4  ;;  %s21_s25 = int_to_ptr.hbm [resolvable:$true] %s20_s25 }
   0x4   :  { %s32_s22 = sshll.u32 %s478_s21, 4  ;;  %s479_s26 = smov 128   ;;  %s33_s22 = int_to_ptr.vmem [resolvable:$true] %s32_s22 }
   0x5   :  { %s480_s27 = smov 8   ;;  %s481_s28 = smov [#allocation2]  }
   0x6   :  { %38 = dma.hbm_to_vmem [thread:$0]  %s31_s20, 6144, %s33_s22, [#allocation6], %s479_s26, %s479_s26, %s480_s27  }
   0x7   :  { %s22_s29 = sshll.u32 %s481_s28, 4  ;;  %s43_s7 = sshll.u32 %s538_s2, 4  ;;  %s23_s29 = int_to_ptr.vmem [resolvable:$true] %s22_s29  ;;  %s44_s7 = int_to_ptr.hbm [resolvable:$true] %s43_s7 }
   0x8   :  { %25 = dma.hbm_to_vmem [thread:$0]  %s21_s25, 128, %s23_s29, [#allocation3]  }
   0x9   :  { %s482_s1 = smov [#allocation7]   ;;  %s483_s9 = smov 16  }
   0xa   :  { %s45_s8 = sshll.u32 %s482_s1, 4  ;;  %s484_s10 = smov 1   ;;  %s46_s8 = int_to_ptr.vmem [resolvable:$true] %s45_s8 }
   0xb   :  { %51 = dma.hbm_to_vmem [thread:$0]  %s44_s7, 48, %s46_s8, [#allocation6], %s483_s9, %s483_s9, %s484_s10  }
   0xc   :  { %470 = dma.done.wait [#allocation3], 128  }
   0xd   :  { %471 = vsyncadd [#allocation3], 4294967168 }
   0xe   :  { %472 = dma.done.wait [#allocation6], 6192  }
   0xf   :  { %473 = vsyncadd [#allocation6], 4294961104  ;;  %v80_v0 = vld [vmem:[#allocation5 + $0x78] sm:$0xff]  ;;  %v79_v1 = vld [vmem:[#allocation5 + $0x70] sm:$0xff]  ;;  %s267_s11 = sshll.u32 %s540_s4, 4  ;;  %s485_s12 = smov [#allocation9]   ;;  %s268_s11 = int_to_ptr.hbm [resolvable:$true] %s267_s11 }
  0x10   :  { %85 = vmatpush.msra.mxu0 %v80_v0  ;;  %v78_v2 = vld [vmem:[#allocation5 + $0x68] sm:$0xff]  ;;  %v77_v3 = vld [vmem:[#allocation5 + $0x60] sm:$0xff]  ;;  %v76_v4 = vld [vmem:[#allocation5 + $0x58] sm:$0xff]  ;;  %s265_s13 = sshll.u32 %s485_s12, 4  ;;  %s486_s14 = smov [#allocation8]   ;;  %s266_s13 = int_to_ptr.vmem [resolvable:$true] %s265_s13 }
  0x11   :  { %v75_v5 = vld [vmem:[#allocation5 + $0x50] sm:$0xff]  ;;  %v74_v6 = vld [vmem:[#allocation5 + $0x48] sm:$0xff]  ;;  %v73_v7 = vld [vmem:[#allocation5 + $0x40] sm:$0xff]  ;;  %s254_s15 = sshll.u32 %s486_s14, 4  ;;  %s256_s18 = sshll.u32 %s539_s3, 4  ;;  %s255_s15 = int_to_ptr.vmem [resolvable:$true] %s254_s15  ;;  %s257_s18 = int_to_ptr.hbm [resolvable:$true] %s256_s18 }
  0x12   :  { %86 = vmatpush.msra.mxu0 %v79_v1  ;;  %v72_v8 = vld [vmem:[#allocation5 + $0x38] sm:$0xff]  ;;  %v71_v9 = vld [vmem:[#allocation5 + $0x30] sm:$0xff]  ;;  %v70_v10 = vld [vmem:[#allocation5 + $0x28] sm:$0xff]  ;;  %s487_s4 = smov [#allocation11]   ;;  %s278_s21 = sshll.u32 %s541_s5, 4  ;;  %s279_s21 = int_to_ptr.hbm [resolvable:$true] %s278_s21 }
  0x13   :  { %v69_v11 = vld [vmem:[#allocation5 + $0x20] sm:$0xff]  ;;  %v68_v12 = vld [vmem:[#allocation5 + $0x18] sm:$0xff]  ;;  %v67_v13 = vld [vmem:[#allocation5 + $0x10] sm:$0xff]  ;;  %s276_s3 = sshll.u32 %s487_s4, 4  ;;  %s277_s3 = int_to_ptr.vmem [resolvable:$true] %s276_s3 }
  0x14   :  { %87 = vmatpush.msra.mxu0 %v78_v2  ;;  %v66_v14 = vld [vmem:[#allocation5 + $0x8] sm:$0xff]  ;;  %v65_v15 = vld [vmem:[#allocation5] sm:$0xff]  ;;  %v64_v16 = vld [vmem:[#allocation2] sm:$0xff] }
  0x15   :  { %v141_v17 = vld [vmem:[#allocation5 + $0xf8] sm:$0xff]  ;;  %v140_v18 = vld [vmem:[#allocation5 + $0xf0] sm:$0xff]  ;;  %v139_v19 = vld [vmem:[#allocation5 + $0xe8] sm:$0xff] }
  0x16   :  { %88 = vmatpush.msra.mxu0 %v77_v3  ;;  %147 = vmatpush.msra.mxu1 %v141_v17  ;;  %v138_v20 = vld [vmem:[#allocation5 + $0xe0] sm:$0xff]  ;;  %v137_v21 = vld [vmem:[#allocation5 + $0xd8] sm:$0xff]  ;;  %v136_v22 = vld [vmem:[#allocation5 + $0xd0] sm:$0xff] }
  0x17   :  { %v135_v23 = vld [vmem:[#allocation5 + $0xc8] sm:$0xff]  ;;  %v134_v24 = vld [vmem:[#allocation5 + $0xc0] sm:$0xff]  ;;  %v133_v25 = vld [vmem:[#allocation5 + $0xb8] sm:$0xff] }
  0x18   :  { %89 = vmatpush.msra.mxu0 %v76_v4  ;;  %148 = vmatpush.msra.mxu1 %v140_v18  ;;  %v132_v26 = vld [vmem:[#allocation5 + $0xb0] sm:$0xff]  ;;  %v131_v27 = vld [vmem:[#allocation5 + $0xa8] sm:$0xff]  ;;  %v130_v28 = vld [vmem:[#allocation5 + $0xa0] sm:$0xff] }
  0x19   :  { %v129_v29 = vld [vmem:[#allocation5 + $0x98] sm:$0xff]  ;;  %v128_v30 = vld [vmem:[#allocation5 + $0x90] sm:$0xff]  ;;  %v127_v31 = vld [vmem:[#allocation5 + $0x88] sm:$0xff] }
  0x1a   :  { %90 = vmatpush.msra.mxu0 %v75_v5  ;;  %149 = vmatpush.msra.mxu1 %v139_v19  ;;  %v126_v32 = vld [vmem:[#allocation5 + $0x80] sm:$0xff]  ;;  %v203_v49 = vld [vmem:[#allocation5 + $0x178] sm:$0xff]  ;;  %v202_v50 = vld [vmem:[#allocation5 + $0x170] sm:$0xff] }
  0x1b   :  { %v311_v33 = vld [vmem:[#allocation7] ss:$0 sm:$0xff]  ;;  %209 = vmatpush.msra.mxu2 %v203_v49  ;;  %v201_v51 = vld [vmem:[#allocation5 + $0x168] sm:$0xff]  ;;  %v199_v53 = vld [vmem:[#allocation5 + $0x158] sm:$0xff] }
  0x1c   :  { %91 = vmatpush.msra.mxu0 %v74_v6  ;;  %150 = vmatpush.msra.mxu1 %v138_v20  ;;  %v200_v52 = vld [vmem:[#allocation5 + $0x160] sm:$0xff]  ;;  %v198_v54 = vld [vmem:[#allocation5 + $0x150] sm:$0xff]  ;;  %v197_v55 = vld [vmem:[#allocation5 + $0x148] sm:$0xff] }
  0x1d   :  { %210 = vmatpush.msra.mxu2 %v202_v50  ;;  %v196_v56 = vld [vmem:[#allocation5 + $0x140] sm:$0xff]  ;;  %v195_v57 = vld [vmem:[#allocation5 + $0x138] sm:$0xff]  ;;  %v194_v58 = vld [vmem:[#allocation5 + $0x130] sm:$0xff] }
  0x1e   :  { %92 = vmatpush.msra.mxu0 %v73_v7  ;;  %151 = vmatpush.msra.mxu1 %v137_v21  ;;  %v193_v59 = vld [vmem:[#allocation5 + $0x128] sm:$0xff]  ;;  %v192_v60 = vld [vmem:[#allocation5 + $0x120] sm:$0xff]  ;;  %v191_v61 = vld [vmem:[#allocation5 + $0x118] sm:$0xff] }
  0x1f   :  { %211 = vmatpush.msra.mxu2 %v201_v51  ;;  %v190_v62 = vld [vmem:[#allocation5 + $0x110] sm:$0xff]  ;;  %v189_v63 = vld [vmem:[#allocation5 + $0x108] sm:$0xff]  ;;  %v188_v0 = vld [vmem:[#allocation5 + $0x100] sm:$0xff] }
  0x20   :  { %93 = vmatpush.msra.mxu0 %v72_v8  ;;  %152 = vmatpush.msra.mxu1 %v136_v22  ;;  %v312_v1 = vld [vmem:[#allocation7 + $0x1] ss:$0 sm:$0xff]  ;;  %v313_v17 = vld [vmem:[#allocation7 + $0x2] ss:$0 sm:$0xff] }
  0x21   :  { %212 = vmatpush.msra.mxu2 %v200_v52 }
  0x22   :  { %94 = vmatpush.msra.mxu0 %v71_v9  ;;  %153 = vmatpush.msra.mxu1 %v135_v23 }
  0x23   :  { %213 = vmatpush.msra.mxu2 %v199_v53 }
  0x24   :  { %95 = vmatpush.msra.mxu0 %v70_v10  ;;  %154 = vmatpush.msra.mxu1 %v134_v24 }
  0x25   :  { %214 = vmatpush.msra.mxu2 %v198_v54 }
  0x26   :  { %96 = vmatpush.msra.mxu0 %v69_v11  ;;  %155 = vmatpush.msra.mxu1 %v133_v25 }
  0x27   :  { %215 = vmatpush.msra.mxu2 %v197_v55 }
  0x28   :  { %97 = vmatpush.msra.mxu0 %v68_v12  ;;  %156 = vmatpush.msra.mxu1 %v132_v26 }
  0x29   :  { %216 = vmatpush.msra.mxu2 %v196_v56 }
  0x2a   :  { %98 = vmatpush.msra.mxu0 %v67_v13  ;;  %157 = vmatpush.msra.mxu1 %v131_v27 }
  0x2b   :  { %217 = vmatpush.msra.mxu2 %v195_v57 }
  0x2c   :  { %99 = vmatpush.msra.mxu0 %v66_v14  ;;  %158 = vmatpush.msra.mxu1 %v130_v28 }
  0x2d   :  { %218 = vmatpush.msra.mxu2 %v194_v58 }
  0x2e   :  { %100 = vmatpush.msra.mxu0 %v65_v15  ;;  %159 = vmatpush.msra.mxu1 %v129_v29 }
  0x2f   :  { %101 = vmatmul.f32.vlgmr.msra.gmra.mxu0 %v64_v16  ;;  %219 = vmatpush.msra.mxu2 %v193_v59 }
  0x30   :  { %160 = vmatpush.msra.mxu1 %v128_v30 }
  0x31   :  { %220 = vmatpush.msra.mxu2 %v192_v60 }
  0x32   :  { %161 = vmatpush.msra.mxu1 %v127_v31 }
  0x33   :  { %221 = vmatpush.msra.mxu2 %v191_v61 }
  0x34   :  { %162 = vmatpush.msra.mxu1 %v126_v32 }
  0x35   :  { %222 = vmatpush.msra.mxu2 %v190_v62 }
  0x37   :  { %223 = vmatpush.msra.mxu2 %v189_v63 }
  0x39   :  { %224 = vmatpush.msra.mxu2 %v188_v0 }
  0xac   :  { %v102_v34 = vpop.f32.mrf.mxu0 }
  0xad   :  { %v103_v35 = vadd.f32 %v311_v33, %v102_v34 }
  0xaf   :  { %v298_v36 = vmul.f32 -1.442695, %v103_v35 }
  0xb1   :  { %314 = vpow2.f32 %v298_v36 }
  0xb7   :  { %v315_v37 = vpop.eup %314 }
  0xb8   :  { %v108_v38 = vadd.f32 1.0, %v315_v37 }
  0xba   :  { %316 = vrcp.f32 %v108_v38  ;;  %v120_v42 = vand.u32 2147483648, %v108_v38  ;;  %v118_v44 = vand.u32 2147483647, %v108_v38  ;;  %vm114_vm1 = vweird.f32 %v108_v38 }
  0xbc   :  { %v121_v46 = vor.u32 1.1754944e-38, %v120_v42  ;;  %vm119_vm3 = vcmp.eq.f32.partialorder %v118_v44, 8.507059e+37 }
  0xc0   :  { %v317_v39 = vpop.eup %316 }
  0xc1   :  { %v110_v40 = vmul.f32 %v317_v39, %v108_v38  ;;  %vm115_vm0 = vweird.f32 %v317_v39 }
  0xc2   :  { %vm116_vm2 = vmor %vm114_vm1, %vm115_vm0 }
  0xc3   :  { %v111_v41 = vsub.f32 1.0, %v110_v40 }
  0xc5   :  { %v112_v43 = vmul.f32 %v317_v39, %v111_v41 }
  0xc7   :  { %v113_v45 = vadd.f32 %v317_v39, %v112_v43 }
  0xc9   :  { %v117_v47 = vsel %vm116_vm2, %v317_v39, %v113_v45 }
  0xca   :  { %v122_v48 = vsel %vm119_vm3, %v121_v46, %v117_v47 }
  0xcb   :  { %124 = vst [vmem:[#allocation8] sm:$0xff] %v122_v48  ;;  %163 = vmatmul.f32.vlgmr.msra.gmra.mxu1 %v122_v48 }
  0xcc   :  { %259 = dma.vmem_to_hbm [thread:$0]  %s255_s15, 128, %s257_s18, [#allocation4]  }
 0x148   :  { %v164_v2 = vpop.f32.mrf.mxu1 }
 0x149   :  { %v165_v3 = vadd.f32 %v312_v1, %v164_v2 }
 0x14b   :  { %v299_v4 = vmul.f32 -1.442695, %v165_v3 }
 0x14d   :  { %318 = vpow2.f32 %v299_v4 }
 0x153   :  { %v319_v5 = vpop.eup %318 }
 0x154   :  { %v170_v6 = vadd.f32 1.0, %v319_v5 }
 0x156   :  { %320 = vrcp.f32 %v170_v6  ;;  %v182_v10 = vand.u32 2147483648, %v170_v6  ;;  %v180_v12 = vand.u32 2147483647, %v170_v6  ;;  %vm176_vm5 = vweird.f32 %v170_v6 }
 0x158   :  { %v183_v14 = vor.u32 1.1754944e-38, %v182_v10  ;;  %vm181_vm7 = vcmp.eq.f32.partialorder %v180_v12, 8.507059e+37 }
 0x15c   :  { %v321_v7 = vpop.eup %320 }
 0x15d   :  { %v172_v8 = vmul.f32 %v321_v7, %v170_v6  ;;  %vm177_vm4 = vweird.f32 %v321_v7 }
 0x15e   :  { %vm178_vm6 = vmor %vm176_vm5, %vm177_vm4 }
 0x15f   :  { %v173_v9 = vsub.f32 1.0, %v172_v8 }
 0x161   :  { %v174_v11 = vmul.f32 %v321_v7, %v173_v9 }
 0x163   :  { %v175_v13 = vadd.f32 %v321_v7, %v174_v11 }
 0x165   :  { %v179_v15 = vsel %vm178_vm6, %v321_v7, %v175_v13 }
 0x166   :  { %v184_v16 = vsel %vm181_vm7, %v183_v14, %v179_v15 }
 0x167   :  { %186 = vst [vmem:[#allocation9] sm:$0xff] %v184_v16  ;;  %225 = vmatmul.f32.vlgmr.msra.gmra.mxu2 %v184_v16 }
 0x168   :  { %270 = dma.vmem_to_hbm [thread:$0]  %s266_s13, 128, %s268_s11, [#allocation10]  }
 0x1ea   :  { %v226_v18 = vpop.f32.mrf.mxu2 }
 0x1eb   :  { %v227_v19 = vadd.f32 %v313_v17, %v226_v18 }
 0x1ed   :  { %v300_v20 = vmul.f32 -1.442695, %v227_v19 }
 0x1ef   :  { %322 = vpow2.f32 %v300_v20 }
 0x1f5   :  { %v323_v21 = vpop.eup %322 }
 0x1f6   :  { %v232_v22 = vadd.f32 1.0, %v323_v21 }
 0x1f8   :  { %324 = vrcp.f32 %v232_v22  ;;  %v244_v26 = vand.u32 2147483648, %v232_v22  ;;  %v242_v28 = vand.u32 2147483647, %v232_v22  ;;  %vm238_vm9 = vweird.f32 %v232_v22 }
 0x1fa   :  { %v245_v30 = vor.u32 1.1754944e-38, %v244_v26  ;;  %vm243_vm11 = vcmp.eq.f32.partialorder %v242_v28, 8.507059e+37 }
 0x1fe   :  { %v325_v23 = vpop.eup %324 }
 0x1ff   :  { %v234_v24 = vmul.f32 %v325_v23, %v232_v22  ;;  %vm239_vm8 = vweird.f32 %v325_v23 }
 0x200   :  { %vm240_vm10 = vmor %vm238_vm9, %vm239_vm8 }
 0x201   :  { %v235_v25 = vsub.f32 1.0, %v234_v24 }
 0x203   :  { %v236_v27 = vmul.f32 %v325_v23, %v235_v25 }
 0x205   :  { %v237_v29 = vadd.f32 %v325_v23, %v236_v27 }
 0x207   :  { %v241_v31 = vsel %vm240_vm10, %v325_v23, %v237_v29 }
 0x208   :  { %v246_v32 = vsel %vm243_vm11, %v245_v30, %v241_v31 }
 0x209   :  { %248 = vst [vmem:[#allocation11] sm:$0xff] %v246_v32 }
 0x20a   :  { %281 = dma.vmem_to_hbm [thread:$0]  %s277_s3, 128, %s279_s21, [#allocation10]  }
 0x20b   :  { %474 = dma.done.wait [#allocation4], 128  }
 0x20c   :  { %475 = vsyncadd [#allocation4], 4294967168 }
 0x20d   :  { %476 = dma.done.wait [#allocation10], 256  }
 0x20e   :  { %477 = vsyncadd [#allocation10], 4294967040 }
 0x20f   :  { %294 = vsyncpa [#allocation3], 1 }
 0x210   :  { %295 = vsyncpa [#allocation6], 1 }
 0x211   :  { %296 = vsyncpa [#allocation4], 1 }
 0x212   :  { %297 = vsyncpa [#allocation10], 1 }

</bundles_post_ra>
